<compile_context>
chip_gen: v7x
topology: tpu7x:2x2x1
jax: 0.10.0
libtpu: 0.0.40
codegen_flags: <defaults>
</compile_context>

<pallas_src>
import jax
import jax.numpy as jnp
from jax.experimental import pallas as pl
from jax.experimental.pallas import tpu as pltpu


def reversed_attention_v2_kernel(x_ref, p_ref, out_ref):
    """Single grid step over the whole batch.

    x_ref:   (B, C, HW)  native dtype, HW lane-dense
    p_ref:   (C+1, 2*Cr+1) f32 packed parameter slab:
               rows [0:C], cols [0:Cr]       -> w1^T  (C, Cr)   reduce-FC weight, transposed
               rows [0:C], cols [Cr:2Cr]     -> w2    (C, Cr)   expand-FC weight
               rows [0:C], col  [2Cr]        -> b2    (C,)
               row  [C],   cols [0:Cr]       -> b1    (Cr,)
    out_ref: (B, C, HW)  native dtype
    """
    x = x_ref[...].astype(jnp.float32)                 # (B, C, HW)
    _, C, HW = x.shape
    Cr = (p_ref.shape[1] - 1) // 2

    # Static slices into the packed parameter slab (no transposes in-kernel).
    w1t = p_ref[0:C, 0:Cr]                             # (C, Cr)
    w2 = p_ref[0:C, Cr:2 * Cr]                         # (C, Cr)
    b2 = p_ref[0:C, 2 * Cr:2 * Cr + 1]                 # (C, 1)
    b1 = p_ref[C:C + 1, 0:Cr]                          # (1, Cr)

    # ---- SELayer: global average pool over spatial (lane) axis ----
    pooled = jnp.sum(x, axis=2, keepdims=True) * (1.0 / HW)           # (B, C, 1)

    # reduce FC + ReLU  (broadcast-multiply + sublane reduction, no MXU)
    h = jnp.sum(w1t[None, :, :] * pooled, axis=1, keepdims=True)      # (B, 1, Cr)
    h = jnp.maximum(h + b1[None, :, :], 0.0)

    # expand FC + Sigmoid  (broadcast-multiply + lane reduction)
    s = jnp.sum(w2[None, :, :] * h, axis=2, keepdims=True)            # (B, C, 1)
    s = jax.nn.sigmoid(s + b2[None, :, :])

    feat = x * s                                                      # (B, C, HW)

    # ---- reversed attention: channel max -> sigmoid(-m) -> scale x ----
    max_feat = jnp.max(feat, axis=1, keepdims=True)                   # (B, 1, HW)
    attn = jax.nn.sigmoid(-max_feat)                                  # == 1 - sigmoid(m)

    out_ref[...] = (attn * x).astype(out_ref.dtype)


def _pack_params(w1, b1, w2, b2):
    """Pack the tiny SE parameters into one lane-dense f32 slab (done once)."""
    Cr, C = w1.shape
    slab = jnp.zeros((C + 1, 2 * Cr + 1), jnp.float32)
    slab = slab.at[0:C, 0:Cr].set(jnp.transpose(w1).astype(jnp.float32))
    slab = slab.at[0:C, Cr:2 * Cr].set(w2.astype(jnp.float32))
    slab = slab.at[0:C, 2 * Cr].set(b2.astype(jnp.float32))
    slab = slab.at[C, 0:Cr].set(b1.astype(jnp.float32))
    return slab


def reversed_attention_v2(x_nchw, params):
    """x_nchw: (B, C, H, W), any float dtype. Returns (B, C, H, W) same dtype."""
    w1, b1, w2, b2 = params          # w1: (Cr, C), b1: (Cr,), w2: (C, Cr), b2: (C,)
    B, C, H, W = x_nchw.shape
    HW = H * W
    Cr = w1.shape[0]

    # NCHW with H,W flattened is already lane-dense (pixels in the lane axis);
    # keep the model's native dtype for kernel I/O.
    x = x_nchw.reshape(B, C, HW)
    pslab = _pack_params(w1, b1, w2, b2)               # (C+1, 2*Cr+1) f32

    out = pl.pallas_call(
        reversed_attention_v2_kernel,
        out_shape=jax.ShapeDtypeStruct((B, C, HW), x.dtype),
        grid=(1,),
        in_specs=[
            pl.BlockSpec((B, C, HW), lambda i: (0, 0, 0)),
            pl.BlockSpec((C + 1, 2 * Cr + 1), lambda i: (0, 0)),
        ],
        out_specs=pl.BlockSpec((B, C, HW), lambda i: (0, 0, 0)),
        compiler_params=pltpu.CompilerParams(
            dimension_semantics=("arbitrary",)),
    )(x, pslab)

    return out.reshape(B, C, H, W)


def reversed_attention_v2_reference(x, params):
    """Pure-JAX NCHW reference mirroring the PyTorch module."""
    w1, b1, w2, b2 = params
    xf = x.astype(jnp.float32)
    pooled = jnp.mean(xf, axis=(2, 3))                       # (B, C)
    h = jax.nn.relu(pooled @ w1.T + b1)                      # (B, Cr)
    s = jax.nn.sigmoid(h @ w2.T + b2)                        # (B, C)
    feat = xf * s[:, :, None, None]                          # SELayer output
    max_feat = jnp.max(feat, axis=1, keepdims=True)          # (B, 1, H, W)
    attn = -1.0 * jax.nn.sigmoid(max_feat) + 1.0
    return (attn * xf).astype(x.dtype)


if __name__ == "__main__":
    B, C, H, W = 2, 4, 16, 16
    reduction = 2
    Cr = max(C // reduction, 1)

    key = jax.random.PRNGKey(0)
    ks = jax.random.split(key, 5)

    x = jax.random.normal(ks[0], (B, C, H, W), jnp.float32)
    w1 = jax.random.normal(ks[1], (Cr, C), jnp.float32) * 0.5   # reduce FC (1x1 conv)
    b1 = jax.random.normal(ks[2], (Cr,), jnp.float32) * 0.1
    w2 = jax.random.normal(ks[3], (C, Cr), jnp.float32) * 0.5   # expand FC (1x1 conv)
    b2 = jax.random.normal(ks[4], (C,), jnp.float32) * 0.1
    params = (w1, b1, w2, b2)

    out = jax.block_until_ready(reversed_attention_v2(x, params))
    ref = reversed_attention_v2_reference(x, params)

    assert out.shape == (B, C, H, W), out.shape
    max_err = float(jnp.max(jnp.abs(out - ref)))
    if max_err < 1e-4:
        print("KERNEL_OK")
    else:
        print(f"MISMATCH max_err={max_err}")
</pallas_src>

<mosaic_0001>
module attributes {stable_mosaic.version = 11 : i64} {
  func.func @reversed_attention_v2_kernel(%arg0: i32, %arg1: memref<2x4x256xf32, #tpu.memory_space<vmem>>, %arg2: memref<5x5xf32, #tpu.memory_space<vmem>>, %arg3: memref<2x4x256xf32, #tpu.memory_space<vmem>>) attributes {dimension_semantics = [#tpu.dimension_semantics<arbitrary>], iteration_bounds = array<i64: 1>, scalar_prefetch = 0 : i64, scratch_operands = 0 : i64, tpu.core_type = #tpu.core_type<tc>, window_params = [{pipeline_mode = #tpu.pipeline_mode<synchronous>, transform_indices = @transform_0, window_bounds = array<i64: 2, 4, 256>}, {pipeline_mode = #tpu.pipeline_mode<synchronous>, transform_indices = @transform_1, window_bounds = array<i64: 5, 5>}, {pipeline_mode = #tpu.pipeline_mode<synchronous>, transform_indices = @transform_2, window_bounds = array<i64: 2, 4, 256>}]} {
    %c0 = arith.constant 0 : index
    %c0_0 = arith.constant 0 : index
    %c0_1 = arith.constant 0 : index
    %0 = vector.load %arg1[%c0, %c0_0, %c0_1] : memref<2x4x256xf32, #tpu.memory_space<vmem>>, vector<2x4x256xf32>
    %c0_2 = arith.constant 0 : index
    %c0_3 = arith.constant 0 : index
    %1 = vector.load %arg2[%c0_2, %c0_3] : memref<5x5xf32, #tpu.memory_space<vmem>>, vector<4x2xf32>
    %c0_4 = arith.constant 0 : index
    %c2 = arith.constant 2 : index
    %2 = vector.load %arg2[%c0_4, %c2] : memref<5x5xf32, #tpu.memory_space<vmem>>, vector<4x2xf32>
    %c0_5 = arith.constant 0 : index
    %c4 = arith.constant 4 : index
    %3 = vector.load %arg2[%c0_5, %c4] : memref<5x5xf32, #tpu.memory_space<vmem>>, vector<4x1xf32>
    %c4_6 = arith.constant 4 : index
    %c0_7 = arith.constant 0 : index
    %4 = vector.load %arg2[%c4_6, %c0_7] : memref<5x5xf32, #tpu.memory_space<vmem>>, vector<1x2xf32>
    %cst = arith.constant dense<0.000000e+00> : vector<2x4xf32>
    %5 = vector.multi_reduction <add>, %0, %cst [2] : vector<2x4x256xf32> to vector<2x4xf32>
    %6 = vector.shape_cast %5 : vector<2x4xf32> to vector<2x4x1xf32>
    %cst_8 = arith.constant 3.906250e-03 : f32
    %7 = vector.broadcast %cst_8 : f32 to vector<2x4x1xf32>
    %8 = arith.mulf %6, %7 : vector<2x4x1xf32>
    %9 = vector.shape_cast %1 : vector<4x2xf32> to vector<1x4x2xf32>
    %10 = vector.broadcast %9 : vector<1x4x2xf32> to vector<2x4x2xf32>
    %11 = vector.broadcast %8 : vector<2x4x1xf32> to vector<2x4x2xf32>
    %12 = arith.mulf %10, %11 : vector<2x4x2xf32>
    %cst_9 = arith.constant dense<0.000000e+00> : vector<2x2xf32>
    %13 = vector.multi_reduction <add>, %12, %cst_9 [1] : vector<2x4x2xf32> to vector<2x2xf32>
    %14 = vector.shape_cast %13 : vector<2x2xf32> to vector<2x1x2xf32>
    %15 = vector.shape_cast %4 : vector<1x2xf32> to vector<1x1x2xf32>
    %16 = vector.broadcast %15 : vector<1x1x2xf32> to vector<2x1x2xf32>
    %17 = arith.addf %14, %16 : vector<2x1x2xf32>
    %cst_10 = arith.constant 0.000000e+00 : f32
    %18 = vector.broadcast %cst_10 : f32 to vector<2x1x2xf32>
    %19 = arith.maximumf %17, %18 : vector<2x1x2xf32>
    %20 = vector.shape_cast %2 : vector<4x2xf32> to vector<1x4x2xf32>
    %21 = vector.broadcast %20 : vector<1x4x2xf32> to vector<2x4x2xf32>
    %22 = vector.broadcast %19 : vector<2x1x2xf32> to vector<2x4x2xf32>
    %23 = arith.mulf %21, %22 : vector<2x4x2xf32>
    %cst_11 = arith.constant dense<0.000000e+00> : vector<2x4xf32>
    %24 = vector.multi_reduction <add>, %23, %cst_11 [2] : vector<2x4x2xf32> to vector<2x4xf32>
    %25 = vector.shape_cast %24 : vector<2x4xf32> to vector<2x4x1xf32>
    %26 = vector.shape_cast %3 : vector<4x1xf32> to vector<1x4x1xf32>
    %27 = vector.broadcast %26 : vector<1x4x1xf32> to vector<2x4x1xf32>
    %28 = arith.addf %25, %27 : vector<2x4x1xf32>
    %29 = arith.negf %28 : vector<2x4x1xf32>
    %30 = math.exp %29 : vector<2x4x1xf32>
    %cst_12 = arith.constant 1.000000e+00 : f32
    %31 = vector.broadcast %cst_12 : f32 to vector<2x4x1xf32>
    %32 = arith.addf %31, %30 : vector<2x4x1xf32>
    %33 = arith.divf %31, %32 : vector<2x4x1xf32>
    %34 = vector.broadcast %33 : vector<2x4x1xf32> to vector<2x4x256xf32>
    %35 = arith.mulf %0, %34 : vector<2x4x256xf32>
    %cst_13 = arith.constant dense<0xFF800000> : vector<2x256xf32>
    %36 = vector.multi_reduction <maximumf>, %35, %cst_13 [1] : vector<2x4x256xf32> to vector<2x256xf32>
    %37 = vector.shape_cast %36 : vector<2x256xf32> to vector<2x1x256xf32>
    %cst_14 = arith.constant 0.000000e+00 : f32
    %38 = vector.broadcast %cst_14 : f32 to vector<2x1x256xf32>
    %39 = arith.subf %38, %37 : vector<2x1x256xf32>
    %40 = arith.negf %39 : vector<2x1x256xf32>
    %41 = math.exp %40 : vector<2x1x256xf32>
    %cst_15 = arith.constant 1.000000e+00 : f32
    %42 = vector.broadcast %cst_15 : f32 to vector<2x1x256xf32>
    %43 = arith.addf %42, %41 : vector<2x1x256xf32>
    %44 = arith.divf %42, %43 : vector<2x1x256xf32>
    %45 = vector.broadcast %44 : vector<2x1x256xf32> to vector<2x4x256xf32>
    %46 = arith.mulf %45, %0 : vector<2x4x256xf32>
    %c0_16 = arith.constant 0 : index
    %c0_17 = arith.constant 0 : index
    %c0_18 = arith.constant 0 : index
    %47 = vector.load %arg3[%c0_16, %c0_17, %c0_18] : memref<2x4x256xf32, #tpu.memory_space<vmem>>, vector<2x4x256xf32>
    tpu.vector_store %arg3[%c0_16, %c0_17, %c0_18], %46 {strides = array<i32>} : memref<2x4x256xf32, #tpu.memory_space<vmem>>, vector<2x4x256xf32>,
    return
  }
  func.func @transform_0(%arg0: i32) -> (i32, i32, i32) {
    %c0_i32 = arith.constant 0 : i32
    %c0_i32_0 = arith.constant 0 : i32
    %c0_i32_1 = arith.constant 0 : i32
    %c0_i32_2 = arith.constant 0 : i32
    return %c0_i32, %c0_i32_0, %c0_i32_1 : i32, i32, i32
  }
  func.func @transform_1(%arg0: i32) -> (i32, i32) {
    %c0_i32 = arith.constant 0 : i32
    %c0_i32_0 = arith.constant 0 : i32
    %c0_i32_1 = arith.constant 0 : i32
    return %c0_i32, %c0_i32_0 : i32, i32
  }
  func.func @transform_2(%arg0: i32) -> (i32, i32, i32) {
    %c0_i32 = arith.constant 0 : i32
    %c0_i32_0 = arith.constant 0 : i32
    %c0_i32_1 = arith.constant 0 : i32
    %c0_i32_2 = arith.constant 0 : i32
    return %c0_i32, %c0_i32_0, %c0_i32_1 : i32, i32, i32
  }
}

</mosaic_0001>

<bundles_post_ra>
// kernel: tpu_custom_call.1
= control target key start
LH: loop header
LB: loop body
LE: loop exit
PB: predicated region body
PF: predicated region fallthrough
CT: control target
= control target key end

     0   :  { %7 = vsyncpa [#allocation3], 0  ;;  %s463_s0 = inlined_call_operand.hbm [shape: f32[2,4,256], index: 0, kind: input, shape index: {}]   ;;  %s464_s1 = inlined_call_operand.hbm [shape: f32[5,5], index: 1, kind: input, shape index: {}]   ;;  %s465_s2 = inlined_call_operand.hbm [shape: f32[2,4,256], index: 2, kind: output, shape index: {}]  }
   0x1   :  { %8 = vsyncpa [#allocation6], 0 }
   0x2   :  { %9 = vsyncpa [#allocation4], 0  ;;  %s363_s9 = smov [#allocation2]   ;;  %s291_s13 = scalar_lea.hbm %s463_s0, 256 }
   0x3   :  { %s15_s10 = sshll.u32 %s363_s9, 4  ;;  %p292_p0 = scmp.ne.s32.totalorder %s463_s0, %s291_s13  ;;  %s16_s10 = int_to_ptr.vmem [resolvable:$true] %s15_s10 }
   0x4   :  { %p295_p1 = scmp.lt.u32.totalorder %s291_s13, %s463_s0 }
   0x6   :  { %p297_p2 = pnand %p295_p1, %p292_p0 }
   0x8   :  { %300 = shalt.err (!%p297_p2)
}
   0x9   :  { %s301_s18 = scalar_lea.vmem %s16_s10, 256  ;;  %p306_p4 = scmp.lt.s32.totalorder %s16_s10, %s16_s10 }
   0xa   :  { %p302_p3 = scmp.ne.s32.totalorder %s16_s10, %s301_s18  ;;  %p307_p5 = scmp.lt.s32.totalorder %s301_s18, %s301_s18 }
   0xc   :  { %p308_p6 = por %p307_p5, %p306_p4 }
   0xe   :  { %p309_p7 = pnand %p308_p6, %p302_p3 }
  0x10   :  { %312 = shalt.err (!%p309_p7)
}
  0x11   :  { %s364_s19 = smov 128   ;;  %s365_s20 = smov 8  }
  0x12   :  { %21 = dma.hbm_to_vmem [thread:$0]  %s463_s0, 256, %s16_s10, [#allocation3], %s364_s19, %s364_s19, %s365_s20  }
  0x13   :  { %s366_s23 = smov [#allocation5]   ;;  %s313_s27 = scalar_lea.hbm %s464_s1, 128 }
  0x14   :  { %s28_s24 = sshll.u32 %s366_s23, 4  ;;  %p314_p8 = scmp.ne.s32.totalorder %s464_s1, %s313_s27  ;;  %s29_s24 = int_to_ptr.vmem [resolvable:$true] %s28_s24 }
  0x15   :  { %p317_p9 = scmp.lt.u32.totalorder %s313_s27, %s464_s1 }
  0x17   :  { %p319_p10 = pnand %p317_p9, %p314_p8 }
  0x19   :  { %322 = shalt.err (!%p319_p10)
}
  0x1a   :  { %s323_s4 = scalar_lea.vmem %s29_s24, 128  ;;  %p328_p12 = scmp.lt.s32.totalorder %s29_s24, %s29_s24 }
  0x1b   :  { %p324_p11 = scmp.ne.s32.totalorder %s29_s24, %s323_s4  ;;  %p329_p13 = scmp.lt.s32.totalorder %s323_s4, %s323_s4 }
  0x1d   :  { %p330_p0 = por %p329_p13, %p328_p12 }
  0x1f   :  { %p331_p1 = pnand %p330_p0, %p324_p11 }
  0x21   :  { %334 = shalt.err (!%p331_p1)
}
  0x22   :  { %31 = dma.hbm_to_vmem [thread:$0]  %s464_s1, 128, %s29_s24, [#allocation6]  }
  0x23   :  { %357 = dma.done.wait [#allocation3], 256  }
  0x24   :  { %358 = vsyncadd [#allocation3], 4294967040 }
  0x25   :  { %359 = dma.done.wait [#allocation6], 128  }
  0x26   :  { %360 = vsyncadd [#allocation6], 4294967168  ;;  %vm48_vm0 = vcmask 1043456   ;;  %v414_v0 = vld [vmem:[#allocation2] sm:$0xff]  ;;  %v416_v1 = vld [vmem:[#allocation2 + $0x8] sm:$0xff]  ;;  %vm63_vm1 = vcmask 11264   ;;  %v82_v23 = vlaneseq }
  0x27   :  { %v420_v2 = vcombine.high %v414_v0, %v414_v0  ;;  %v49_v3 = vsel %vm48_vm0, %v414_v0, 0.0  ;;  %v426_v4 = vcombine.high %v416_v1, %v416_v1  ;;  %v54_v6 = vsel %vm48_vm0, %v416_v1, 0.0  ;;  %v40_v10 = vld [vmem:[#allocation5] sm:$0xf]  ;;  %v41_v29 = vld [vmem:[#allocation5 + $0x4] sm:$0x1] }
  0x28   :  { %v83_v28 = vshrl.u32 %v82_v23, 7  ;;  %s367_s1 = smov 2   ;;  %s368_s6 = smov 126   ;;  %v369_v49 = vmov 4   ;;  %v370_v62 = vmov 839922192  }
  0x29   :  { %v50_v5 = vsel %vm48_vm0, %v420_v2, 0.0  ;;  %v55_v7 = vsel %vm48_vm0, %v426_v4, 0.0  ;;  %263 = vset.pattern.permute.xlu1 %v369_v49  ;;  %264 = vset.pattern.permute.xlu0 %v369_v49  ;;  %v137_v63 = vunpack.c.l.s4 %v370_v62  ;;  %s371_s7 = smov [#allocation7]  }
  0x2a   :  { %v51_v8 = vadd.f32 %v50_v5, %v49_v3  ;;  %v56_v9 = vadd.f32 %v55_v7, %v54_v6  ;;  %v84_v34 = vsub.s32 0, %v83_v28  ;;  %s235_s8 = sshll.u32 %s371_s7, 4  ;;  %s236_s8 = int_to_ptr.vmem [resolvable:$true] %s235_s8 }
  0x2b   :  { %v138_v3 = vunpack.c.0.s8 %v137_v63  ;;  %s335_s9 = scalar_lea.vmem %s236_s8, 256  ;;  %p340_p3 = scmp.lt.s32.totalorder %s236_s8, %s236_s8 }
  0x2c   :  { %52 = vadd.xlane.f32.xlu0 %v51_v8  ;;  %p336_p2 = scmp.ne.s32.totalorder %s236_s8, %s335_s9  ;;  %p341_p4 = scmp.lt.s32.totalorder %s335_s9, %s335_s9 }
  0x2d   :  { %v141_v5 = vsub.s32 %v138_v3, %v83_v28 }
  0x2e   :  { %p342_p5 = por %p341_p4, %p340_p3 }
  0x30   :  { %57 = vadd.xlane.f32.xlu0 %v56_v9  ;;  %p343_p6 = pnand %p342_p5, %p336_p2 }
  0xb9   :  { %v53_v11 = vpop.xlane.xlu0 %52 }
  0xba   :  { %v59_v12 = vmul.f32 0.00390625, %v53_v11 }
  0xbc   :  { %v61_v13 = vmul.f32 %v59_v12, %v40_v10 }
  0xbd   :  { %v58_v14 = vpop.xlane.xlu0 %57 }
  0xbe   :  { %v64_v15 = vsel %vm63_vm1, %v61_v13, 0.0  ;;  %v60_v16 = vmul.f32 0.00390625, %v58_v14 }
  0xbf   :  { %v65_v17 = vrot.slane %v64_v15, 4 }
  0xc0   :  { %v62_v18 = vmul.f32 %v60_v16, %v40_v10 }
  0xc1   :  { %v66_v19 = vadd.f32 %v65_v17, %v64_v15 }
  0xc2   :  { %v71_v20 = vsel %vm63_vm1, %v62_v18, 0.0 }
  0xc3   :  { %v67_v21 = vrot.slane %v66_v19, 2  ;;  %v72_v22 = vrot.slane %v71_v20, 4 }
  0xc5   :  { %v68_v24 = vadd.f32 %v67_v21, %v66_v19  ;;  %v73_v25 = vadd.f32 %v72_v22, %v71_v20 }
  0xc7   :  { %v74_v26 = vrot.slane %v73_v25, 2  ;;  %v69_v27 = vrot.slane %v68_v24, 1 }
  0xc9   :  { %v75_v30 = vadd.f32 %v74_v26, %v73_v25  ;;  %v70_v31 = vadd.f32 %v69_v27, %v68_v24 }
  0xcb   :  { %v76_v32 = vrot.slane %v75_v30, 1  ;;  %v78_v33 = vadd.f32 %v70_v31, %v41_v29 }
  0xcd   :  { %v80_v35 = vmax.f32 %v78_v33, 0.0  ;;  %v77_v36 = vadd.f32 %v76_v32, %v75_v30 }
  0xcf   :  { %v85_v37 = vrot.slane %v80_v35, %v84_v34  ;;  %v79_v38 = vadd.f32 %v77_v36, %v41_v29 }
  0xd1   :  { %92 = vrot.lane.b32.xlu1 %v85_v37, %s367_s1  ;;  %v81_v39 = vmax.f32 %v79_v38, 0.0 }
  0xd3   :  { %v89_v40 = vrot.slane %v81_v39, %v84_v34 }
  0xd5   :  { %94 = vrot.lane.b32.xlu1 %v89_v40, %s367_s1 }
 0x143   :  { %v93_v41 = vpop.permute.xlu1 %92 }
 0x144   :  { %v98_v42 = vmul.f32 %v93_v41, %v40_v10 }
 0x146   :  { %102 = vrot.lane.b32.xlu0 %v98_v42, %s368_s6 }
 0x147   :  { %v95_v43 = vpop.permute.xlu1 %94 }
 0x148   :  { %v99_v44 = vmul.f32 %v95_v43, %v40_v10 }
 0x14a   :  { %104 = vrot.lane.b32.xlu1 %v99_v44, %s368_s6 }
 0x1b8   :  { %v103_v45 = vpop.permute.xlu0 %102 }
 0x1b9   :  { %v108_v46 = vsel %vm63_vm1, %v103_v45, 0.0 }
 0x1ba   :  { %109 = vadd.xlane.f32.xlu1 %v108_v46 }
 0x1bc   :  { %v105_v47 = vpop.permute.xlu1 %104 }
 0x1bd   :  { %v111_v48 = vsel %vm63_vm1, %v105_v47, 0.0 }
 0x1be   :  { %112 = vadd.xlane.f32.xlu0 %v111_v48 }
 0x247   :  { %v110_v50 = vpop.xlane.xlu1 %109 }
 0x248   :  { %v114_v51 = vadd.f32 %v110_v50, %v40_v10 }
 0x24a   :  { %v248_v52 = vmul.f32 -1.442695, %v114_v51 }
 0x24b   :  { %v113_v53 = vpop.xlane.xlu0 %112 }
 0x24c   :  { %267 = vpow2.f32 %v248_v52  ;;  %v115_v54 = vadd.f32 %v113_v53, %v40_v10 }
 0x24e   :  { %v249_v55 = vmul.f32 -1.442695, %v115_v54 }
 0x250   :  { %269 = vpow2.f32 %v249_v55 }
 0x256   :  { %v268_v56 = vpop.eup %267 }
 0x257   :  { %v122_v57 = vadd.f32 1.0, %v268_v56 }
 0x259   :  { %271 = vrcp.f32 %v122_v57 }
 0x25a   :  { %v270_v58 = vpop.eup %269 }
 0x25b   :  { %v123_v59 = vadd.f32 1.0, %v270_v58 }
 0x25d   :  { %273 = vrcp.f32 %v123_v59 }
 0x263   :  { %v272_v60 = vpop.eup %271 }
 0x264   :  { %130 = vperm.xlu1 %263, %v272_v60  }
 0x267   :  { %v274_v61 = vpop.eup %273 }
 0x268   :  { %134 = vperm.xlu0 %264, %v274_v61  }
 0x2e3   :  { %v131_v6 = vpop.permute.xlu1 %130 }
 0x2e4   :  { %v142_v7 = vrot.slane %v131_v6, %v141_v5 }
 0x2e6   :  { %v152_v8 = vmul.f32 %v142_v7, %v414_v0 }
 0x2e7   :  { %v135_v9 = vpop.permute.xlu0 %134 }
 0x2e8   :  { %v156_v10 = vcombine.high %v152_v8, %v152_v8  ;;  %v160_v11 = vsel %vm48_vm0, %v152_v8, -inf  ;;  %v149_v12 = vrot.slane %v135_v9, %v141_v5 }
 0x2e9   :  { %v161_v13 = vrot.slane %v160_v11, 4 }
 0x2ea   :  { %v167_v14 = vsel %vm48_vm0, %v156_v10, -inf  ;;  %v153_v15 = vmul.f32 %v149_v12, %v416_v1 }
 0x2eb   :  { %v162_v16 = vmax.f32 %v160_v11, %v161_v13  ;;  %v168_v17 = vrot.slane %v167_v14, 4 }
 0x2ec   :  { %v157_v18 = vcombine.high %v153_v15, %v153_v15  ;;  %v174_v19 = vsel %vm48_vm0, %v153_v15, -inf }
 0x2ed   :  { %v163_v20 = vrot.slane %v162_v16, 2  ;;  %v169_v21 = vmax.f32 %v167_v14, %v168_v17  ;;  %v175_v22 = vrot.slane %v174_v19, 4 }
 0x2ee   :  { %v181_v23 = vsel %vm48_vm0, %v157_v18, -inf }
 0x2ef   :  { %v164_v24 = vmax.f32 %v162_v16, %v163_v20  ;;  %v170_v25 = vrot.slane %v169_v21, 2  ;;  %v176_v26 = vmax.f32 %v174_v19, %v175_v22  ;;  %v182_v27 = vrot.slane %v181_v23, 4 }
 0x2f1   :  { %v165_v28 = vrot.slane %v164_v24, 1  ;;  %v171_v29 = vmax.f32 %v169_v21, %v170_v25  ;;  %v177_v30 = vrot.slane %v176_v26, 2  ;;  %v183_v31 = vmax.f32 %v181_v23, %v182_v27 }
 0x2f3   :  { %v166_v32 = vmax.f32 %v164_v24, %v165_v28  ;;  %v172_v33 = vrot.slane %v171_v29, 1  ;;  %v178_v34 = vmax.f32 %v176_v26, %v177_v30  ;;  %v184_v35 = vrot.slane %v183_v31, 2 }
 0x2f5   :  { %v173_v36 = vmax.f32 %v171_v29, %v172_v33  ;;  %v188_v37 = vsub.f32 0.0, %v166_v32  ;;  %v179_v38 = vrot.slane %v178_v34, 1  ;;  %v185_v39 = vmax.f32 %v183_v31, %v184_v35 }
 0x2f7   :  { %v189_v40 = vsub.f32 0.0, %v173_v36  ;;  %v250_v41 = vmul.f32 -1.442695, %v188_v37  ;;  %v180_v42 = vmax.f32 %v178_v34, %v179_v38  ;;  %v186_v43 = vrot.slane %v185_v39, 1 }
 0x2f9   :  { %275 = vpow2.f32 %v250_v41  ;;  %v251_v44 = vmul.f32 -1.442695, %v189_v40  ;;  %v187_v45 = vmax.f32 %v185_v39, %v186_v43  ;;  %v190_v46 = vsub.f32 0.0, %v180_v42 }
 0x2fb   :  { %277 = vpow2.f32 %v251_v44  ;;  %v191_v47 = vsub.f32 0.0, %v187_v45  ;;  %v252_v48 = vmul.f32 -1.442695, %v190_v46 }
 0x2fd   :  { %279 = vpow2.f32 %v252_v48  ;;  %v253_v49 = vmul.f32 -1.442695, %v191_v47 }
 0x2ff   :  { %281 = vpow2.f32 %v253_v49 }
 0x303   :  { %v276_v50 = vpop.eup %275 }
 0x304   :  { %v204_v51 = vadd.f32 1.0, %v276_v50 }
 0x305   :  { %v278_v52 = vpop.eup %277 }
 0x306   :  { %v205_v53 = vadd.f32 1.0, %v278_v52  ;;  %283 = vrcp.f32 %v204_v51 }
 0x307   :  { %v280_v54 = vpop.eup %279 }
 0x308   :  { %285 = vrcp.f32 %v205_v53  ;;  %v206_v55 = vadd.f32 1.0, %v280_v54 }
 0x309   :  { %v282_v56 = vpop.eup %281 }
 0x30a   :  { %v207_v57 = vadd.f32 1.0, %v282_v56  ;;  %287 = vrcp.f32 %v206_v55 }
 0x30c   :  { %289 = vrcp.f32 %v207_v57 }
 0x310   :  { %v284_v58 = vpop.eup %283 }
 0x311   :  { %v216_v60 = vmul.f32 %v284_v58, %v414_v0 }
 0x312   :  { %v286_v59 = vpop.eup %285 }
 0x313   :  { %v217_v61 = vmul.f32 %v286_v59, %v420_v2 }
 0x314   :  { %v288_v62 = vpop.eup %287 }
 0x315   :  { %v224_v63 = vcombine.low %v216_v60, %v217_v61  ;;  %v218_v5 = vmul.f32 %v288_v62, %v416_v1 }
 0x316   :  { %v290_v3 = vpop.eup %289 }
 0x317   :  { %v219_v6 = vmul.f32 %v290_v3, %v426_v4  ;;  %228 = vst [vmem:[#allocation7] sm:$0xff] %v224_v63 }
 0x319   :  { %v225_v7 = vcombine.low %v218_v5, %v219_v6 }
 0x31b   :  { %229 = vst [vmem:[#allocation7 + $0x8] sm:$0xff] %v225_v7 }
 0x31c   :  { %346 = shalt.err (!%p343_p6)
}
 0x31d   :  { %s347_s12 = scalar_lea.hbm %s465_s2, 256 }
 0x31e   :  { %p348_p7 = scmp.ne.s32.totalorder %s465_s2, %s347_s12  ;;  %p351_p8 = scmp.lt.u32.totalorder %s347_s12, %s465_s2 }
 0x320   :  { %p353_p9 = pnand %p351_p8, %p348_p7 }
 0x322   :  { %356 = shalt.err (!%p353_p9)
}
 0x323   :  { %241 = dma.vmem_to_hbm [thread:$0]  %s236_s8, 256, %s465_s2, [#allocation4], %s364_s19, %s364_s19, %s365_s20  }
 0x324   :  { %361 = dma.done.wait [#allocation4], 256  }
 0x325   :  { %362 = vsyncadd [#allocation4], 4294967040 }
 0x326   :  { %245 = vsyncpa [#allocation3], 1 }
 0x327   :  { %246 = vsyncpa [#allocation6], 1 }
 0x328   :  { %247 = vsyncpa [#allocation4], 1 }

</bundles_post_ra>
